<compile_context>
chip_gen: v7x
topology: tpu7x:2x2x1
jax: 0.10.0
libtpu: 0.0.40
codegen_flags: <defaults>
</compile_context>

<pallas_src>
import functools
import math

import jax
import jax.numpy as jnp
from jax import lax
from jax.experimental import pallas as pl
from jax.experimental.pallas import tpu as pltpu


_NEG_INF = -1000000000.0  # matches torch masked_fill(-1e9)


@functools.lru_cache(maxsize=None)
def _vmem_limit_bytes():
    """Per-generation VMEM budget: ~40 MiB on v7x (64 MiB/TC), ~100 MiB v5e/v6e."""
    cap = 64 * 1024 * 1024  # conservative fallback (valid on every generation)
    try:
        cap = pltpu.get_tpu_info().vmem_capacity_bytes
    except Exception:
        pass
    return int(min(max(cap - 24 * 1024 * 1024, 32 * 1024 * 1024),
                   100 * 1024 * 1024))


def _choose_tile(dim, preferred):
    """Return (tile, padded_dim): tile divides padded_dim; tile is a multiple of
    128 unless the whole dim fits in one block."""
    preferred = max(128, (preferred // 128) * 128)
    if dim <= preferred:
        return dim, dim                      # single full-extent block
    for t in (preferred, 512, 256, 128):
        if t <= preferred and dim % t == 0:
            return t, dim
    padded = ((dim + 127) // 128) * 128      # pad -> aligned tiles, bounded VMEM
    for t in (preferred, 512, 256, 128):
        if t <= preferred and padded % t == 0:
            return t, padded
    return 128, padded


def _pad_axis(x, axis, new_size):
    if x.shape[axis] == new_size:
        return x
    pad = [(0, 0)] * x.ndim
    pad[axis] = (0, new_size - x.shape[axis])
    return jnp.pad(x, pad)


# --------------------------------------------------------------------------
# Kernels
# --------------------------------------------------------------------------
def _attn_probs_kernel(*refs, scale, has_bias, compute_dtype):
    """Full-KV softmax; writes output AND normalized p_attn (module semantics)."""
    if has_bias:
        q_ref, k_ref, v_ref, b_ref, out_ref, p_ref = refs
    else:
        q_ref, k_ref, v_ref, out_ref, p_ref = refs

    # Fold 1/sqrt(d_head) into q, cast MXU operands (bf16 full-rate), f32 acc.
    q = (q_ref[0, 0] * scale).astype(compute_dtype)              # [tq, D]
    k = k_ref[0, 0].astype(compute_dtype)                        # [Sk, D]
    v = v_ref[0, 0].astype(compute_dtype)                        # [Sk, D]

    s = lax.dot_general(q, k, (((1,), (1,)), ((), ())),
                        preferred_element_type=jnp.float32)      # [tq, Sk]
    if has_bias:
        s = s + b_ref[0, 0].astype(jnp.float32)                  # additive bias

    s_max = jnp.max(s, axis=-1, keepdims=True)
    e = jnp.exp(s - s_max)
    p = e / jnp.sum(e, axis=-1, keepdims=True)   # exact normalization for p_attn

    out = lax.dot_general(p.astype(compute_dtype), v, (((1,), (0,)), ((), ())),
                          preferred_element_type=jnp.float32)    # [tq, D]
    out_ref[0, 0] = out.astype(out_ref.dtype)
    p_ref[0, 0] = p.astype(p_ref.dtype)


def _flash_kernel(*refs, scale, has_bias, nh, nbh, kv_axis, sk, sk_pad,
                  compute_dtype, packed):
    """KV-tiled online softmax; `nh` heads folded per grid step (nh=1 -> per-head
    grid).  packed=True writes a lane-dense [tq, nh*D] output block."""
    if has_bias:
        q_ref, k_ref, v_ref, b_ref, out_ref, m_sc, l_sc, acc_sc = refs
    else:
        q_ref, k_ref, v_ref, out_ref, m_sc, l_sc, acc_sc = refs

    kv = pl.program_id(kv_axis)

    @pl.when(kv == 0)
    def _init():
        m_sc[...] = jnp.full(m_sc.shape, -jnp.inf, dtype=m_sc.dtype)
        l_sc[...] = jnp.zeros(l_sc.shape, dtype=l_sc.dtype)
        acc_sc[...] = jnp.zeros(acc_sc.shape, dtype=acc_sc.dtype)

    bias0 = None
    if has_bias and nbh == 1:
        bias0 = b_ref[0, 0].astype(jnp.float32)                  # [tq, tk]

    for h in range(nh):                                          # static unroll
        q = (q_ref[0, h] * scale).astype(compute_dtype)          # [tq, D]
        k = k_ref[0, h].astype(compute_dtype)                    # [tk, D]
        v = v_ref[0, h].astype(compute_dtype)                    # [tk, D]

        s = lax.dot_general(q, k, (((1,), (1,)), ((), ())),
                            preferred_element_type=jnp.float32)  # [tq, tk]
        if has_bias:
            bias = bias0 if nbh == 1 else b_ref[0, h].astype(jnp.float32)
            s = s + bias
        if sk_pad > sk:
            # In-kernel masking of padded key columns (no extra HBM stream).
            tk = s.shape[-1]
            col = kv * tk + lax.broadcasted_iota(jnp.int32, s.shape, 1)
            s = jnp.where(col < sk, s, _NEG_INF)

        m_prev = m_sc[h]                                         # [tq, 1]
        m_new = jnp.maximum(m_prev, jnp.max(s, axis=-1, keepdims=True))
        alpha = jnp.exp(m_prev - m_new)
        p = jnp.exp(s - m_new)                                   # [tq, tk]
        l_sc[h] = alpha * l_sc[h] + jnp.sum(p, axis=-1, keepdims=True)
        acc_sc[h] = alpha * acc_sc[h] + lax.dot_general(
            p.astype(compute_dtype), v, (((1,), (0,)), ((), ())),
            preferred_element_type=jnp.float32)
        m_sc[h] = m_new

    @pl.when(kv == pl.num_programs(kv_axis) - 1)
    def _finalize():
        pieces = [acc_sc[h] * pl.reciprocal(l_sc[h], approx=True)
                  for h in range(nh)]
        if packed:
            out = pieces[0] if nh == 1 else jnp.concatenate(pieces, axis=-1)
            out_ref[0] = out.astype(out_ref.dtype)   # lane-dense [tq, nh*D] store
        else:
            out_ref[0, 0] = pieces[0].astype(out_ref.dtype)


# --------------------------------------------------------------------------
# Wrapper
# --------------------------------------------------------------------------
def attention(q, k, v, mask=None, d_head=None, *, mask_bias=None,
              return_attn=True, q_block=256, kv_block=512,
              compute_dtype=None, pack_heads=None, kv_buffers=2):
    """q, k, v: [B, H, S, D]; mask: [B or 1, 1 or H, Sq, Sk] (0 == masked) or None.

    return_attn=True  -> (out [B,H,Sq,D], p_attn [B,H,Sq,Sk])   (module semantics)
    return_attn=False -> out only (flash-style, no O(S^2) HBM writeback)
    mask_bias: optional precomputed additive bias (skips the mask->bias pass).
    kv_buffers: K/V pipeline depth in the flash path (3 can help on v5e).
    """
    B, H, Sq, D = q.shape
    Sk = k.shape[2]
    if d_head is None:
        d_head = D
    scale = 1.0 / math.sqrt(d_head)
    if compute_dtype is None:
        compute_dtype = jnp.bfloat16 if q.dtype == jnp.float32 else q.dtype

    # Additive mask bias built once (bf16: half the DMA of an f32 bias, no
    # in-kernel cmp+select / int unpack).
    if mask_bias is not None:
        bias = mask_bias
    elif mask is not None:
        bias = jnp.where(mask == 0, jnp.float32(_NEG_INF),
                         jnp.float32(0.0)).astype(jnp.bfloat16)
    else:
        bias = None
    has_bias = bias is not None
    vmem_limit = _vmem_limit_bytes()

    # ---------------------- return_attn path (out + p_attn) -----------------
    if return_attn:
        # Cap tq so the [tq, Sk] f32 scores slab stays <= ~4 MiB (v7x-safe).
        budget_rows = max(128, (4 * 1024 * 1024) // max(4 * Sk, 1))
        tq, Sq_pad = _choose_tile(Sq, min(q_block, budget_rows))
        q_in = _pad_axis(q, 2, Sq_pad)
        bias_in = _pad_axis(bias, 2, Sq_pad) if has_bias else None

        grid = (B, H, Sq_pad // tq)
        in_specs = [
            pl.BlockSpec((1, 1, tq, D), lambda b, h, i: (b, h, i, 0)),   # q
            pl.BlockSpec((1, 1, Sk, D), lambda b, h, i: (b, h, 0, 0)),   # k
            pl.BlockSpec((1, 1, Sk, D), lambda b, h, i: (b, h, 0, 0)),   # v
        ]
        if has_bias:
            b0 = bias.shape[0] == 1
            h0 = bias.shape[1] == 1
            in_specs.append(pl.BlockSpec(
                (1, 1, tq, Sk),
                lambda b, h, i: ((0 if b0 else b), (0 if h0 else h), i, 0)))

        kernel = functools.partial(_attn_probs_kernel, scale=scale,
                                   has_bias=has_bias,
                                   compute_dtype=compute_dtype)
        out, p_attn = pl.pallas_call(
            kernel,
            out_shape=(jax.ShapeDtypeStruct((B, H, Sq_pad, D), q.dtype),
                       jax.ShapeDtypeStruct((B, H, Sq_pad, Sk), q.dtype)),
            grid_spec=pltpu.PrefetchScalarGridSpec(
                num_scalar_prefetch=0, grid=grid,
                in_specs=in_specs,
                out_specs=[
                    pl.BlockSpec((1, 1, tq, D), lambda b, h, i: (b, h, i, 0)),
                    pl.BlockSpec((1, 1, tq, Sk), lambda b, h, i: (b, h, i, 0)),
                ]),
            compiler_params=pltpu.CompilerParams(
                dimension_semantics=("parallel", "parallel", "parallel"),
                vmem_limit_bytes=vmem_limit),
        )(*([q_in, k, v] + ([bias_in] if has_bias else [])))
        if Sq_pad != Sq:
            out, p_attn = out[:, :, :Sq, :], p_attn[:, :, :Sq, :]
        return out, p_attn

    # ---------------------- flash path (output only) ------------------------
    tq, Sq_pad = _choose_tile(Sq, q_block)
    tk, Sk_pad = _choose_tile(Sk, kv_block)
    if pack_heads is None:
        # Lane-dense packed output pays off when D is a fraction of a vreg lane
        # row and the folded heads fill it exactly.
        pack_heads = (D % 128 != 0) and ((H * D) % 128 == 0)

    q_in = _pad_axis(q, 2, Sq_pad)
    k_in = _pad_axis(k, 2, Sk_pad)
    v_in = _pad_axis(v, 2, Sk_pad)
    bias_in = (_pad_axis(_pad_axis(bias, 2, Sq_pad), 3, Sk_pad)
               if has_bias else None)

    nq, nk = Sq_pad // tq, Sk_pad // tk
    pm = {} if kv_buffers == 2 else {"pipeline_mode": pl.Buffered(int(kv_buffers))}

    if pack_heads:
        # Fold all heads per grid step; emit lane-dense [B, Sq_pad, H*D].
        grid = (B, nq, nk)
        in_specs = [
            pl.BlockSpec((1, H, tq, D), lambda b, i, j: (b, 0, i, 0)),
            pl.BlockSpec((1, H, tk, D), lambda b, i, j: (b, 0, j, 0), **pm),
            pl.BlockSpec((1, H, tk, D), lambda b, i, j: (b, 0, j, 0), **pm),
        ]
        nbh = 1
        if has_bias:
            nbh = bias.shape[1]
            b0 = bias.shape[0] == 1
            in_specs.append(pl.BlockSpec(
                (1, nbh, tq, tk),
                lambda b, i, j: ((0 if b0 else b), 0, i, j), **pm))
        kernel = functools.partial(
            _flash_kernel, scale=scale, has_bias=has_bias, nh=H, nbh=nbh,
            kv_axis=2, sk=Sk, sk_pad=Sk_pad, compute_dtype=compute_dtype,
            packed=True)
        out_packed = pl.pallas_call(
            kernel,
            out_shape=jax.ShapeDtypeStruct((B, Sq_pad, H * D), q.dtype),
            grid_spec=pltpu.PrefetchScalarGridSpec(
                num_scalar_prefetch=0, grid=grid,
                in_specs=in_specs,
                out_specs=pl.BlockSpec((1, tq, H * D),
                                       lambda b, i, j: (b, i, 0)),
                scratch_shapes=[
                    pltpu.VMEM((H, tq, 1), jnp.float32),   # running max
                    pltpu.VMEM((H, tq, 1), jnp.float32),   # running denom
                    pltpu.VMEM((H, tq, D), jnp.float32),   # accumulator
                ]),
            compiler_params=pltpu.CompilerParams(
                dimension_semantics=("parallel", "parallel", "arbitrary"),
                vmem_limit_bytes=vmem_limit),
        )(*([q_in, k_in, v_in] + ([bias_in] if has_bias else [])))
        out = out_packed[:, :Sq, :].reshape(B, Sq, H, D)
        return jnp.transpose(out, (0, 2, 1, 3))          # back to [B, H, Sq, D]

    # Per-head grid (D already lane-dense, or H*D not a multiple of 128).
    grid = (B, H, nq, nk)
    in_specs = [
        pl.BlockSpec((1, 1, tq, D), lambda b, h, i, j: (b, h, i, 0)),
        pl.BlockSpec((1, 1, tk, D), lambda b, h, i, j: (b, h, j, 0), **pm),
        pl.BlockSpec((1, 1, tk, D), lambda b, h, i, j: (b, h, j, 0), **pm),
    ]
    if has_bias:
        b0 = bias.shape[0] == 1
        h0 = bias.shape[1] == 1
        in_specs.append(pl.BlockSpec(
            (1, 1, tq, tk),
            lambda b, h, i, j: ((0 if b0 else b), (0 if h0 else h), i, j), **pm))
    kernel = functools.partial(
        _flash_kernel, scale=scale, has_bias=has_bias, nh=1, nbh=1,
        kv_axis=3, sk=Sk, sk_pad=Sk_pad, compute_dtype=compute_dtype,
        packed=False)
    out = pl.pallas_call(
        kernel,
        out_shape=jax.ShapeDtypeStruct((B, H, Sq_pad, D), q.dtype),
        grid_spec=pltpu.PrefetchScalarGridSpec(
            num_scalar_prefetch=0, grid=grid,
            in_specs=in_specs,
            out_specs=pl.BlockSpec((1, 1, tq, D),
                                   lambda b, h, i, j: (b, h, i, 0)),
            scratch_shapes=[
                pltpu.VMEM((1, tq, 1), jnp.float32),
                pltpu.VMEM((1, tq, 1), jnp.float32),
                pltpu.VMEM((1, tq, D), jnp.float32),
            ]),
        compiler_params=pltpu.CompilerParams(
            dimension_semantics=("parallel", "parallel", "parallel",
                                 "arbitrary"),
            vmem_limit_bytes=vmem_limit),
    )(*([q_in, k_in, v_in] + ([bias_in] if has_bias else [])))
    return out[:, :, :Sq, :] if Sq_pad != Sq else out


# --------------------------------------------------------------------------
# Reference + self-test
# --------------------------------------------------------------------------
def _reference(q, k, v, mask, d_head):
    scores = jnp.einsum("bhqd,bhkd->bhqk", q, k) / math.sqrt(d_head)
    if mask is not None:
        scores = jnp.where(mask == 0, _NEG_INF, scores)
    p = jax.nn.softmax(scores, axis=-1)
    return jnp.einsum("bhqk,bhkd->bhqd", p, v), p


if __name__ == "__main__":
    # Tolerance widened for bf16 MXU operands vs the f32 reference.
    tol = dict(atol=3e-2, rtol=3e-2)

    # --- Case 1: small module-like shapes (d_head = D = 32) -----------------
    B, H, S, D = 2, 4, 8, 32
    kq, kk, kv_, km = jax.random.split(jax.random.PRNGKey(0), 4)
    q = jax.random.normal(kq, (B, H, S, D), dtype=jnp.float32)
    k = jax.random.normal(kk, (B, H, S, D), dtype=jnp.float32)
    v = jax.random.normal(kv_, (B, H, S, D), dtype=jnp.float32)
    mask = (jax.random.uniform(km, (B, 1, S, S)) > 0.2).astype(jnp.int32)
    mask = jnp.maximum(mask, jnp.eye(S, dtype=jnp.int32)[None, None])

    ref_out, ref_p = _reference(q, k, v, mask, D)
    ref_out_nm, ref_p_nm = _reference(q, k, v, None, D)

    out, p_attn = attention(q, k, v, mask)                   # module semantics
    out_flash = attention(q, k, v, mask, return_attn=False)  # packed lane-dense
    out_nm, p_nm = attention(q, k, v, None)
    out_flash_nm = attention(q, k, v, None, return_attn=False)
    jax.block_until_ready((out, p_attn, out_flash, out_nm, p_nm, out_flash_nm))

    assert jnp.allclose(out, ref_out, **tol), "output mismatch"
    assert jnp.allclose(p_attn, ref_p, **tol), "p_attn mismatch"
    assert jnp.allclose(out_flash, ref_out, **tol), "flash output mismatch"
    assert jnp.allclose(out_nm, ref_out_nm, **tol), "no-mask output mismatch"
    assert jnp.allclose(p_nm, ref_p_nm, **tol), "no-mask p_attn mismatch"
    assert jnp.allclose(out_flash_nm, ref_out_nm, **tol), "no-mask flash mismatch"

    # --- Case 2: unaligned sequence -> 128-padding + KV tiling + iota mask --
    B2, H2, S2, D2 = 1, 2, 300, 32
    kq, kk, kv_, km = jax.random.split(jax.random.PRNGKey(1), 4)
    q2 = jax.random.normal(kq, (B2, H2, S2, D2), dtype=jnp.float32)
    k2 = jax.random.normal(kk, (B2, H2, S2, D2), dtype=jnp.float32)
    v2 = jax.random.normal(kv_, (B2, H2, S2, D2), dtype=jnp.float32)
    mask2 = (jax.random.uniform(km, (B2, 1, S2, S2)) > 0.2).astype(jnp.int32)
    mask2 = jnp.maximum(mask2, jnp.eye(S2, dtype=jnp.int32)[None, None])
    ref_out2, ref_p2 = _reference(q2, k2, v2, mask2, D2)

    out2, p2 = attention(q2, k2, v2, mask2, q_block=128, kv_block=128)
    out2_f = attention(q2, k2, v2, mask2, return_attn=False,
                       q_block=128, kv_block=128, pack_heads=False)
    out2_fp = attention(q2, k2, v2, mask2, return_attn=False,
                        q_block=128, kv_block=128, pack_heads=True)
    jax.block_until_ready((out2, p2, out2_f, out2_fp))

    assert jnp.allclose(out2, ref_out2, **tol), "padded output mismatch"
    assert jnp.allclose(p2, ref_p2, **tol), "padded p_attn mismatch"
    assert jnp.allclose(out2_f, ref_out2, **tol), "padded flash mismatch"
    assert jnp.allclose(out2_fp, ref_out2, **tol), "padded packed flash mismatch"

    print("KERNEL_OK")
</pallas_src>

<mosaic_0001>
module attributes {stable_mosaic.version = 11 : i64} {
  func.func @_attn_probs_kernel(%arg0: i32, %arg1: i32, %arg2: i32, %arg3: memref<1x1x8x32xf32, #tpu.memory_space<vmem>>, %arg4: memref<1x1x8x32xf32, #tpu.memory_space<vmem>>, %arg5: memref<1x1x8x32xf32, #tpu.memory_space<vmem>>, %arg6: memref<1x1x8x8xbf16, #tpu.memory_space<vmem>>, %arg7: memref<1x1x8x32xf32, #tpu.memory_space<vmem>>, %arg8: memref<1x1x8x8xf32, #tpu.memory_space<vmem>>) attributes {dimension_semantics = [#tpu.dimension_semantics<parallel>, #tpu.dimension_semantics<parallel>, #tpu.dimension_semantics<parallel>], iteration_bounds = array<i64: 2, 4, 1>, scalar_prefetch = 0 : i64, scratch_operands = 0 : i64, tpu.core_type = #tpu.core_type<tc>, window_params = [{transform_indices = @transform_0, window_bounds = array<i64: 1, 1, 8, 32>}, {transform_indices = @transform_1, window_bounds = array<i64: 1, 1, 8, 32>}, {transform_indices = @transform_2, window_bounds = array<i64: 1, 1, 8, 32>}, {transform_indices = @transform_3, window_bounds = array<i64: 1, 1, 8, 8>}, {transform_indices = @transform_4, window_bounds = array<i64: 1, 1, 8, 32>}, {transform_indices = @transform_5, window_bounds = array<i64: 1, 1, 8, 8>}]} {
    %c0 = arith.constant 0 : index
    %c0_0 = arith.constant 0 : index
    %c0_1 = arith.constant 0 : index
    %c0_2 = arith.constant 0 : index
    %0 = vector.load %arg3[%c0, %c0_0, %c0_1, %c0_2] : memref<1x1x8x32xf32, #tpu.memory_space<vmem>>, vector<1x1x8x32xf32>
    %1 = vector.shape_cast %0 : vector<1x1x8x32xf32> to vector<8x32xf32>
    %cst = arith.constant 0.176776692 : f32
    %2 = vector.broadcast %cst : f32 to vector<8x32xf32>
    %3 = arith.mulf %1, %2 : vector<8x32xf32>
    %4 = arith.truncf %3 : vector<8x32xf32> to vector<8x32xbf16>
    %c0_3 = arith.constant 0 : index
    %c0_4 = arith.constant 0 : index
    %c0_5 = arith.constant 0 : index
    %c0_6 = arith.constant 0 : index
    %5 = vector.load %arg4[%c0_3, %c0_4, %c0_5, %c0_6] : memref<1x1x8x32xf32, #tpu.memory_space<vmem>>, vector<1x1x8x32xf32>
    %6 = vector.shape_cast %5 : vector<1x1x8x32xf32> to vector<8x32xf32>
    %7 = arith.truncf %6 : vector<8x32xf32> to vector<8x32xbf16>
    %c0_7 = arith.constant 0 : index
    %c0_8 = arith.constant 0 : index
    %c0_9 = arith.constant 0 : index
    %c0_10 = arith.constant 0 : index
    %8 = vector.load %arg5[%c0_7, %c0_8, %c0_9, %c0_10] : memref<1x1x8x32xf32, #tpu.memory_space<vmem>>, vector<1x1x8x32xf32>
    %9 = vector.shape_cast %8 : vector<1x1x8x32xf32> to vector<8x32xf32>
    %10 = arith.truncf %9 : vector<8x32xf32> to vector<8x32xbf16>
    %cst_11 = arith.constant dense<0.000000e+00> : vector<8x8xf32>
    %11 = tpu.matmul %4, %7, %cst_11 {dimension_numbers = #tpu.dot_dimension_numbers<[1], [1], [0], [0], [0, 0, 1, 0], [], []>} : vector<8x32xbf16>, vector<8x32xbf16>, vector<8x8xf32> -> vector<8x8xf32>
    %c0_12 = arith.constant 0 : index
    %c0_13 = arith.constant 0 : index
    %c0_14 = arith.constant 0 : index
    %c0_15 = arith.constant 0 : index
    %12 = vector.load %arg6[%c0_12, %c0_13, %c0_14, %c0_15] : memref<1x1x8x8xbf16, #tpu.memory_space<vmem>>, vector<1x1x8x8xbf16>
    %13 = vector.shape_cast %12 : vector<1x1x8x8xbf16> to vector<8x8xbf16>
    %14 = arith.extf %13 : vector<8x8xbf16> to vector<8x8xf32>
    %15 = arith.addf %11, %14 : vector<8x8xf32>
    %cst_16 = arith.constant dense<0xFF800000> : vector<8xf32>
    %16 = vector.multi_reduction <maximumf>, %15, %cst_16 [1] : vector<8x8xf32> to vector<8xf32>
    %17 = vector.shape_cast %16 : vector<8xf32> to vector<8x1xf32>
    %18 = vector.broadcast %17 : vector<8x1xf32> to vector<8x8xf32>
    %19 = arith.subf %15, %18 : vector<8x8xf32>
    %20 = math.exp %19 : vector<8x8xf32>
    %cst_17 = arith.constant dense<0.000000e+00> : vector<8xf32>
    %21 = vector.multi_reduction <add>, %20, %cst_17 [1] : vector<8x8xf32> to vector<8xf32>
    %22 = vector.shape_cast %21 : vector<8xf32> to vector<8x1xf32>
    %23 = vector.broadcast %22 : vector<8x1xf32> to vector<8x8xf32>
    %24 = arith.divf %20, %23 : vector<8x8xf32>
    %25 = arith.truncf %24 : vector<8x8xf32> to vector<8x8xbf16>
    %cst_18 = arith.constant dense<0.000000e+00> : vector<8x32xf32>
    %26 = tpu.matmul %25, %10, %cst_18 {dimension_numbers = #tpu.dot_dimension_numbers<[1], [0], [0], [1], [0, 0, 1, 1], [], []>} : vector<8x8xbf16>, vector<8x32xbf16>, vector<8x32xf32> -> vector<8x32xf32>
    %c0_19 = arith.constant 0 : index
    %c0_20 = arith.constant 0 : index
    %c0_21 = arith.constant 0 : index
    %c0_22 = arith.constant 0 : index
    %27 = vector.load %arg7[%c0_19, %c0_20, %c0_21, %c0_22] : memref<1x1x8x32xf32, #tpu.memory_space<vmem>>, vector<1x1x8x32xf32>
    %28 = vector.shape_cast %27 : vector<1x1x8x32xf32> to vector<8x32xf32>
    %29 = vector.shape_cast %26 : vector<8x32xf32> to vector<1x1x8x32xf32>
    tpu.vector_store %arg7[%c0_19, %c0_20, %c0_21, %c0_22], %29 {strides = array<i32>} : memref<1x1x8x32xf32, #tpu.memory_space<vmem>>, vector<1x1x8x32xf32>,
    %c0_23 = arith.constant 0 : index
    %c0_24 = arith.constant 0 : index
    %c0_25 = arith.constant 0 : index
    %c0_26 = arith.constant 0 : index
    %30 = vector.load %arg8[%c0_23, %c0_24, %c0_25, %c0_26] : memref<1x1x8x8xf32, #tpu.memory_space<vmem>>, vector<1x1x8x8xf32>
    %31 = vector.shape_cast %30 : vector<1x1x8x8xf32> to vector<8x8xf32>
    %32 = vector.shape_cast %24 : vector<8x8xf32> to vector<1x1x8x8xf32>
    tpu.vector_store %arg8[%c0_23, %c0_24, %c0_25, %c0_26], %32 {strides = array<i32>} : memref<1x1x8x8xf32, #tpu.memory_space<vmem>>, vector<1x1x8x8xf32>,
    return
  }
  func.func @transform_0(%arg0: i32, %arg1: i32, %arg2: i32) -> (i32, i32, i32, i32) {
    %c0_i32 = arith.constant 0 : i32
    %c0_i32_0 = arith.constant 0 : i32
    return %arg0, %arg1, %arg2, %c0_i32 : i32, i32, i32, i32
  }
  func.func @transform_1(%arg0: i32, %arg1: i32, %arg2: i32) -> (i32, i32, i32, i32) {
    %c0_i32 = arith.constant 0 : i32
    %c0_i32_0 = arith.constant 0 : i32
    %c0_i32_1 = arith.constant 0 : i32
    return %arg0, %arg1, %c0_i32, %c0_i32_0 : i32, i32, i32, i32
  }
  func.func @transform_2(%arg0: i32, %arg1: i32, %arg2: i32) -> (i32, i32, i32, i32) {
    %c0_i32 = arith.constant 0 : i32
    %c0_i32_0 = arith.constant 0 : i32
    %c0_i32_1 = arith.constant 0 : i32
    return %arg0, %arg1, %c0_i32, %c0_i32_0 : i32, i32, i32, i32
  }
  func.func @transform_3(%arg0: i32, %arg1: i32, %arg2: i32) -> (i32, i32, i32, i32) {
    %c0_i32 = arith.constant 0 : i32
    %c0_i32_0 = arith.constant 0 : i32
    %c0_i32_1 = arith.constant 0 : i32
    return %arg0, %c0_i32, %arg2, %c0_i32_0 : i32, i32, i32, i32
  }
  func.func @transform_4(%arg0: i32, %arg1: i32, %arg2: i32) -> (i32, i32, i32, i32) {
    %c0_i32 = arith.constant 0 : i32
    %c0_i32_0 = arith.constant 0 : i32
    return %arg0, %arg1, %arg2, %c0_i32 : i32, i32, i32, i32
  }
  func.func @transform_5(%arg0: i32, %arg1: i32, %arg2: i32) -> (i32, i32, i32, i32) {
    %c0_i32 = arith.constant 0 : i32
    %c0_i32_0 = arith.constant 0 : i32
    return %arg0, %arg1, %arg2, %c0_i32 : i32, i32, i32, i32
  }
}

</mosaic_0001>

<bundles_post_ra>
// kernel: tpu_custom_call.1
= control target key start
LH: loop header
LB: loop body
LE: loop exit
PB: predicated region body
PF: predicated region fallthrough
CT: control target
= control target key end

     0   :  { %s1473_s0 = inlined_call_operand.hbm [shape: f32[2,4,8,32], index: 0, kind: input, shape index: {}]   ;;  %s1474_s1 = inlined_call_operand.hbm [shape: f32[2,4,8,32], index: 1, kind: input, shape index: {}]   ;;  %s1475_s2 = inlined_call_operand.hbm [shape: f32[2,4,8,32], index: 2, kind: input, shape index: {}]   ;;  %s1476_s3 = inlined_call_operand.vmem [shape: bf16[2,1,8,8], index: 3, kind: input, shape index: {}]   ;;  %s1477_s4 = inlined_call_operand.hbm [shape: f32[2,4,8,32], index: 4, kind: output, shape index: {0}]   ;;  %s1478_s5 = inlined_call_operand.hbm [shape: f32[2,4,8,8], index: 5, kind: output, shape index: {1}]  }
   0x1   :  { %1491 = sst [smem:[#allocation23_spill]] %s1474_s1 }
   0x2   :  { %11 = vsyncpa [#allocation3], 0 }
   0x3   :  { %13 = vsyncpa [#allocation3 + $0x1], 0 }
   0x4   :  { %14 = vsyncpa [#allocation6], 0 }
   0x5   :  { %16 = vsyncpa [#allocation6 + $0x1], 0 }
   0x6   :  { %17 = vsyncpa [#allocation4], 0 }
   0x7   :  { %19 = vsyncpa [#allocation4 + $0x1], 0 }
   0x8   :  { %20 = vsyncpa [#allocation10], 0 }
   0x9   :  { %22 = vsyncpa [#allocation10 + $0x1], 0  ;;  %s1144_s18 = smov 0   ;;  %s1146_s19 = smov 0  }
   0xa   :  { %s1148_s20 = smov 0   ;;  %s1150_s21 = smov 0  }
   0xb   :  { %s1152_s22 = smov 0   ;;  %s1154_s23 = smov 0  }
   0xc   :  { %s1156_s24 = smov 0   ;;  %s1158_s25 = smov 0  }
   0xd LB: > { %1492 = sst [smem:[#allocation15_spill]] %s1077_s18  ;;  %s1185_s26 = sadd.s32 4294967295, %s1105_s25   ;;  %s1105_s25 = sphi %s1158_s25, %s28_s25   ;;  %s1101_s24 = sphi %s1156_s24, %s1523_s24   ;;  %s1097_s23 = sphi %s1154_s23, %s1522_s23   ;;  %s1093_s22 = sphi %s1152_s22, %s1521_s22   ;;  %s1089_s21 = sphi %s1150_s21, %s1520_s21   ;;  %s1085_s20 = sphi %s1148_s20, %s1526_s20   ;;  %s1081_s19 = sphi %s1146_s19, %s1525_s19   ;;  %s1077_s18 = sphi %s1144_s18, %s1524_s18  }
   0xe   : > { %1493 = sst [smem:[#allocation16_spill]] %s1097_s23  ;;  %s737_s27 = sadd.s32 4294967294, %s1105_s25  }
   0xf   : > { %1494 = sst [smem:[#allocation17_spill]] %s1101_s24  ;;  %s43_s28 = sadd.s32 1, %s1097_s23 }
  0x10   : > { %1495 = sst [smem:[#allocation18_spill]] %s1105_s25  ;;  %s47_s29 = sadd.s32 1, %s1101_s24 }
  0x11   : > { %p45_p0 = scmp.ge.s32.totalorder %s43_s28, 4  ;;  %s58_s30 = sadd.s32 1, %s1085_s20 }
  0x12   : > { %p65_p1 = scmp.ne.s32.totalorder %s1085_s20, %s1081_s19  ;;  %p66_p2 = scmp.eq.s32.totalorder %s1105_s25, 0 }
  0x13   : > { %s1528_s28 = smov (%p45_p0, %s43_s28), 0  ;;  %s1530_s29 = smov (!%p45_p0, %s47_s29), %s1101_s24 }
  0x14   : > { %1496 = sst [smem:[#allocation19_spill]] %s1528_s28  ;;  %s52_s6 = ssub.s32 %s1097_s23, %s1528_s28 }
  0x15   : > { %p1199_p3 = por %p66_p2, %p65_p1  ;;  %p49_p4 = scmp.ge.s32.totalorder %s1530_s29, 2 }
  0x16   : > { %p71_p5 = scmp.ne.s32.totalorder %s1081_s19, %s1077_s18  ;;  %p72_p6 = scmp.eq.s32.totalorder %s1185_s26, 0 }
  0x17   : > { %p183_p7 = scmp.eq.s32.totalorder %s1185_s26, 7  ;;  %s1532_s29 = smov (%p49_p4, %s1530_s29), 0 }
  0x18   : > { %1498 = sst [smem:[#allocation20_spill]] %s1532_s29  ;;  %p1209_p8 = por %p72_p6, %p71_p5 }
  0x19   : > { %p1213_p9 = por %p183_p7, %p65_p1  ;;  %s51_s10 = ssub.s32 %s1101_s24, %s1532_s29 }
  0x1a   : > { %s1499_s8 = scalar_select %p1209_p8, 1, 0 }
  0x1b   : > { %s1500_s9 = scalar_select %p1213_p9, 1, 0 }
  0x1c   : > { %p189_p10 = scmp.eq.s32.totalorder %s737_s27, 7  ;;  %s53_s11 = sor.u32 %s52_s6, %s51_s10 }
  0x1d   : > { %p56_p11 = scmp.eq.s32.totalorder %s53_s11, 0  ;;  %p809_p13 = scmp.lt.s32.totalorder %s1105_s25, 8 }
  0x1e   : > { %p1219_p12 = por %p189_p10, %p71_p5  ;;  %s1480_s13 = sand.u32 1, %s1085_s20  }
  0x1f   : > { %s1226_s14 = scalar_select %p56_p11, %s1085_s20, %s58_s30  }
  0x20   : > { %s1501_s12 = scalar_select %p1219_p12, 1, 0 }
  0x21   : > { %1503 = sst [smem:[#allocation22_spill]] %s1226_s14  ;;  %s1230_s15 = sshll.u32 %s1480_s13, 3 }
  0x22   : > { %1502 = sst [smem:[#allocation21_spill]] %s1501_s12  ;;  %s741_s16 = sshll.u32 %s1101_s24, 2 }
  0x23   : > { %s249_s17 = sadd.s32 %s1097_s23, %s741_s16  ;;  %p1236_p0 = pnand %p809_p13, %p1199_p3 }
  0x24   : > { %s1240_s6 = sshll.u32 %s249_s17, 7  ;;  %s260_s10 = sand.u32 1, %s1105_s25  }
  0x25   : > { %s1504_s27 = scalar_select %p1236_p0, 1, 0 }
  0x26   : > { %s1505_s1 = sld [smem:[#allocation23_spill]]  ;;  %s264_s16 = scalar_lea.vmem [#allocation5], %s1230_s15 }
  0x27   : > { %s273_s7 = sshll.u32 %s264_s16, 4  ;;  %s1254_s13 = scalar_lea.sflag [#allocation6], %s260_s10  ;;  %s1251_s7 = int_to_ptr.vmem [resolvable:$true] %s273_s7 }
  0x28   : > { %p1260_p4 = pneg %p1236_p0 }
  0x2c   : > { %s1247_s30 = scalar_lea.hbm %s1505_s1, %s1240_s6  ;;  %s886_s16 = scalar_lea.hbm %s1505_s1, 1024 }
  0x2d   : > { %s881_s17 = scalar_lea.hbm %s1247_s30, 128  ;;  %p887_p7 = scmp.lt.u32.totalorder %s1247_s30, %s1505_s1 }
  0x2e   : > { %p882_p3 = scmp.ne.s32.totalorder %s1247_s30, %s881_s17  ;;  %p888_p10 = scmp.lt.u32.totalorder %s886_s16, %s881_s17 }
  0x2f   : > { %p890_p13 = scmp.lt.u32.totalorder %s881_s17, %s1247_s30 }
  0x30   : > { %p884_p5 = pnand %p1260_p4, %p882_p3  ;;  %p889_p11 = por %p888_p10, %p887_p7 }
  0x32   : > { %p885_p6 = pneg %p884_p5  ;;  %p891_p1 = por %p890_p13, %p889_p11 }
  0x34   : > { %p892_p2 = pnand %p891_p1, %p885_p6 }
  0x36   : > { %895 = shalt.err (!%p892_p2)
}
  0x37   : > { %s896_s10 = scalar_lea.vmem %s1251_s7, 128  ;;  %s1107_s29 = smov [#allocation5]  }
  0x38   : > { %p897_p3 = scmp.ne.s32.totalorder %s1251_s7, %s896_s10  ;;  %s901_s11 = sshll.u32 %s1107_s29, 4  ;;  %s902_s11 = int_to_ptr.vmem [resolvable:$false] %s901_s11 }
  0x39   : > { %s903_s23 = scalar_lea.vmem %s902_s11, 256  ;;  %p904_p9 = scmp.lt.s32.totalorder %s1251_s7, %s902_s11 }
  0x3a   : > { %p899_p5 = pnand %p897_p3, %p1260_p4  ;;  %p905_p8 = scmp.lt.s32.totalorder %s903_s23, %s896_s10 }
  0x3c   : > { %p900_p12 = pneg %p899_p5  ;;  %p906_p7 = por %p905_p8, %p904_p9 }
  0x3e   : > { %p907_p10 = pnand %p906_p7, %p900_p12 }
  0x40   : > { %910 = shalt.err (!%p907_p10)
}
  0x41   : > { %798 = dma.hbm_to_vmem [thread:$0]  (!%p1236_p0), %s1247_s30, 128, %s1251_s7, %s1254_s13  }
  0x42   : > { %p1507_p1 = scmp.lt.s32.totalorder %s1105_s25, 9  ;;  %p1508_p2 = scmp.ge.s32.totalorder %s1105_s25, 1 }
  0x43   : > { %s1296_s10 = scalar_lea.hbm %s1473_s0, %s1240_s6  ;;  %s243_s29 = scalar_lea.vmem [#allocation2], %s1230_s15 }
  0x44   : > { %p1288_p6 = pnand %p1508_p2, %p1507_p1  ;;  %s253_s11 = sshll.u32 %s243_s29, 4  ;;  %s1299_s11 = int_to_ptr.vmem [resolvable:$true] %s253_s11 }
  0x45   : > { %s1305_s23 = scalar_lea.hbm %s1475_s2, %s1240_s6  ;;  %s1510_s1 = sand.u32 1, %s1085_s20  }
  0x46   : > { %s1509_s24 = scalar_select %p1288_p6, 1, 0 }
  0x47   : > { %s240_s14 = scalar_lea.sflag [#allocation3], %s1510_s1  ;;  %s911_s12 = scalar_lea.hbm %s1296_s10, 128 }
  0x48   : > { %p912_p8 = scmp.ne.s32.totalorder %s1296_s10, %s911_s12  ;;  %s916_s18 = scalar_lea.hbm %s1473_s0, 1024 }
  0x49   : > { %p917_p11 = scmp.lt.u32.totalorder %s1296_s10, %s1473_s0  ;;  %p918_p13 = scmp.lt.u32.totalorder %s916_s18, %s911_s12 }
  0x4a   : > { %p914_p9 = pnand %p912_p8, %p1260_p4  ;;  %p920_p5 = scmp.lt.u32.totalorder %s911_s12, %s1296_s10 }
  0x4b   : > { %p919_p3 = por %p918_p13, %p917_p11 }
  0x4c   : > { %p915_p12 = pneg %p914_p9 }
  0x4d   : > { %p921_p7 = por %p920_p5, %p919_p3 }
  0x4f   : > { %p922_p10 = pnand %p921_p7, %p915_p12 }
  0x51   : > { %925 = shalt.err (!%p922_p10)
}
  0x52   : > { %s926_s1 = scalar_lea.vmem %s1299_s11, 128  ;;  %s1108_s6 = smov [#allocation2]  }
  0x53   : > { %p927_p1 = scmp.ne.s32.totalorder %s1299_s11, %s926_s1  ;;  %s931_s30 = sshll.u32 %s1108_s6, 4  ;;  %s932_s30 = int_to_ptr.vmem [resolvable:$false] %s931_s30 }
  0x54   : > { %s933_s25 = scalar_lea.vmem %s932_s30, 256  ;;  %p934_p9 = scmp.lt.s32.totalorder %s1299_s11, %s932_s30 }
  0x55   : > { %p929_p2 = pnand %p927_p1, %p1260_p4  ;;  %p935_p6 = scmp.lt.s32.totalorder %s933_s25, %s926_s1 }
  0x57   : > { %p930_p8 = pneg %p929_p2  ;;  %p936_p11 = por %p935_p6, %p934_p9 }
  0x59   : > { %p937_p13 = pnand %p936_p11, %p930_p8 }
  0x5b   : > { %940 = shalt.err (!%p937_p13)
}
  0x5c   : > { %795 = dma.hbm_to_vmem [thread:$0]  (!%p1236_p0), %s1296_s10, 128, %s1299_s11, %s240_s14  }
  0x5d   : > { %s284_s18 = scalar_lea.vmem [#allocation7], %s1230_s15  ;;  %s941_s7 = scalar_lea.hbm %s1305_s23, 128 }
  0x5e   : > { %s293_s12 = sshll.u32 %s284_s18, 4  ;;  %p942_p12 = scmp.ne.s32.totalorder %s1305_s23, %s941_s7  ;;  %s294_s12 = int_to_ptr.vmem [resolvable:$true] %s293_s12 }
  0x5f   : > { %s946_s29 = scalar_lea.hbm %s1475_s2, 1024  ;;  %p947_p5 = scmp.lt.u32.totalorder %s1305_s23, %s1475_s2 }
  0x60   : > { %p944_p6 = pnand %p942_p12, %p1260_p4  ;;  %p948_p7 = scmp.lt.u32.totalorder %s946_s29, %s941_s7 }
  0x61   : > { %p950_p1 = scmp.lt.u32.totalorder %s941_s7, %s1305_s23 }
  0x62   : > { %p945_p3 = pneg %p944_p6  ;;  %p949_p10 = por %p948_p7, %p947_p5 }
  0x64   : > { %p951_p2 = por %p950_p1, %p949_p10 }
  0x66   : > { %p952_p8 = pnand %p951_p2, %p945_p3 }
  0x68   : > { %955 = shalt.err (!%p952_p8)
}
  0x69   : > { %s956_s14 = scalar_lea.vmem %s294_s12, 128  ;;  %s1109_s15 = smov [#allocation7]  }
  0x6a   : > { %p957_p9 = scmp.ne.s32.totalorder %s294_s12, %s956_s14  ;;  %s961_s10 = sshll.u32 %s1109_s15, 4  ;;  %s962_s10 = int_to_ptr.vmem [resolvable:$false] %s961_s10 }
  0x6b   : > { %s963_s11 = scalar_lea.vmem %s962_s10, 256  ;;  %p964_p12 = scmp.lt.s32.totalorder %s294_s12, %s962_s10 }
  0x6c   : > { %p959_p11 = pnand %p957_p9, %p1260_p4  ;;  %p965_p6 = scmp.lt.s32.totalorder %s963_s11, %s956_s14 }
  0x6e   : > { %p960_p13 = pneg %p959_p11  ;;  %p966_p0 = por %p965_p6, %p964_p12 }
  0x70   : > { %p967_p5 = pnand %p966_p0, %p960_p13 }
  0x72   : > { %970 = shalt.err (!%p967_p5)
}
  0x73   : > { %p1511_p7 = scmp.ne.s32.totalorder %s1504_s27, 0  ;;  %p1512_p3 = scmp.ne.s32.totalorder %s1509_s24, 0 }
  0x74   : > { %s1352_s28 = sand.u32 (!%p1512_p3), 1, %s1081_s19   ;;  %p1513_p0 = scmp.ne.s32.totalorder (!%p1512_p3), %s1499_s8, 0 }
  0x75   : > { %801 = dma.hbm_to_vmem [thread:$0]  (!%p1511_p7), %s1305_s23, 128, %s294_s12, %s1254_s13  }
  0x76   : > { %312 = sbr.rel (%p1512_p3) target bundleno = 897 (0x381), region = 36  ;;  %s1355_s30 = sshll.u32 (!%p1512_p3), %s1352_s28, 3 }
  0x77   : > { %s315_s25 = scalar_lea.sflag (!%p1512_p3), [#allocation3], %s1352_s28  ;;  %s318_s18 = scalar_lea.vmem (!%p1512_p3), [#allocation2], %s1355_s30 }
  0x7d   : > { %1060 = dma.done.wait (%p1513_p0), %s315_s25, 128  }
  0x7e   : > { %1062 = vsyncadd (%p1513_p0), %s315_s25, 4294967168  ;;  %s323_s13 = sand.u32 1, %s1185_s26   ;;  %s327_s24 = scalar_lea.vmem [#allocation5], %s1355_s30 }
  0x7f   : > { %s324_s27 = scalar_lea.sflag [#allocation6], %s323_s13 }
  0x80   : > { %1064 = dma.done.wait (%p1513_p0), %s324_s27, 256  }
  0x81   : > { %1066 = vsyncadd (%p1513_p0), %s324_s27, 4294967040  ;;  %v1110_v0 = vmov 0.0   ;;  %vm1111_vm0 = vmmov 0   ;;  %v396_v1 = vld [vmem:[%s327_s24] sm:$0xff]  ;;  %vm402_vm1 = vcmask 261120   ;;  %v393_v2 = vld [vmem:[%s318_s18] sm:$0xff] }
  0x82   : > { %770 = vmatprep.subr.bf16.mxu0 %v1110_v0  ;;  %772 = vmatprep.mubr.msk.bf16.mxu0 %vm1111_vm0, %v1110_v0  ;;  %v397_v3 = vpack.c.bf16 %v396_v1, %v396_v1  ;;  %v394_v5 = vmul.f32 0.17677669, %v393_v2  ;;  %p385_p4 = scmp.lt.s32.totalorder %s1093_s22, 1  ;;  %vm449_vm2 = vcmask 64512   ;;  %s336_s17 = scalar_lea.vmem [#allocation7], %s1355_s30  ;;  %vm465_vm3 = vcmask 1043456  }
  0x83   : > { %776 = vmatprep.subr.bf16.mxu1 %v1110_v0  ;;  %778 = vmatprep.mubr.msk.bf16.mxu1 %vm1111_vm0, %v1110_v0  ;;  %v398_v20 = vld [vmem:[%s336_s17] sm:$0xff]  ;;  %s384_s16 = scalar_lea.vmem [#allocation9], %s1355_s30  ;;  %s760_s29 = sshll.u32 %s1093_s22, 2 }
  0x84   : > { %v407_v4 = vsel %vm402_vm1, %v397_v3, 0  ;;  %v395_v6 = vpack.c.bf16 %v394_v5, %v394_v5  ;;  %s386_s26 = scalar_select %p385_p4, %s1093_s22, 1  ;;  %v399_v21 = vpack.c.bf16 %v398_v20, %v398_v20 }
  0x85   : > { %771 = vmatpush3.bf16.xpose.msra.mxu0 %v407_v4  ;;  %s1384_s1 = sadd.s32 %s1089_s21, %s760_s29  ;;  %s549_s11 = sshll.u32 %s384_s16, 4  ;;  %s550_s11 = int_to_ptr.vmem [resolvable:$true] %s549_s11 }
  0x86   : > { %s755_s8 = sshll.u32 %s386_s26, 2  ;;  %v467_v22 = vsel %vm465_vm3, %v399_v21, 0  ;;  %s761_s6 = sshll.u32 %s1384_s1, 7 }
  0x87   : > { %s391_s7 = scalar_lea.vmem %s1476_s3, %s755_s8  ;;  %777 = vmatpush3.bf16.msra.mxu1 %v467_v22  ;;  %s1392_s10 = scalar_lea.hbm %s1478_s5, %s761_s6 }
  0x88   : > { %v400_v7 = vld [vmem:[%s391_s7] sm:$0xf]  ;;  %s517_s25 = scalar_lea.sflag [#allocation10], %s1352_s28  ;;  %s971_s18 = scalar_lea.vmem %s550_s11, 128 }
  0x89   : > { %v401_v8 = vunpack.c.l.bf16 %v400_v7  ;;  %p972_p10 = scmp.ne.s32.totalorder %s550_s11, %s971_s18  ;;  %p1514_p1 = scmp.ne.s32.totalorder %s1500_s9, 0 }
  0x8a   : > { %s1112_s22 = smov [#allocation9]  }
  0x8b   : > { %p973_p2 = pnand %p972_p10, %p1514_p1  ;;  %s975_s21 = sshll.u32 %s1112_s22, 4  ;;  %s976_s21 = int_to_ptr.vmem [resolvable:$false] %s975_s21 }
  0x8c   : > { %773 = vmatmul.mubr.msk.bf16.vlgmr.msra.gmra.mrb[0].mxu0 %vm402_vm1, %v395_v6  ;;  %s977_s13 = scalar_lea.vmem %s976_s21, 256  ;;  %p978_p9 = scmp.lt.s32.totalorder %s550_s11, %s976_s21 }
  0x8d   : > { %p974_p8 = pneg %p973_p2  ;;  %p979_p11 = scmp.lt.s32.totalorder %s977_s13, %s971_s18 }
  0x8f   : > { %p980_p13 = por %p979_p11, %p978_p9 }
  0x91   : > { %p981_p12 = pnand %p980_p13, %p974_p8 }
 0x15f   : > { %v443_v9 = vpop.f32.mrb[0].mxu0 }
 0x160   : > { %v444_v10 = vadd.f32 %v443_v9, %v401_v8  ;;  %v774_v11 = vpop.f32.mrb[1].mxu0 }
 0x161   : > { %v446_v12 = vpop.f32.mrb[2].mxu0 }
 0x162   : > { %v775_v13 = vpop.f32.mrb[3].mxu0  ;;  %v450_v14 = vsel %vm449_vm2, %v444_v10, -inf }
 0x163   : > { %451 = vmax.xlane.f32.xlu0 %v450_v14 }
 0x1f0   : > { %v452_v15 = vpop.xlane.xlu0 %451 }
 0x1f1   : > { %v453_v16 = vsub.f32 %v444_v10, %v452_v15 }
 0x1f3   : > { %v454_v17 = vmul.f32 1.442695, %v453_v16 }
 0x1f5   : > { %877 = vpow2.f32 %v454_v17 }
 0x1ff   : > { %v878_v18 = vpop.eup %877 }
 0x200   : > { %v456_v19 = vsel %vm449_vm2, %v878_v18, 0.0 }
 0x201   : > { %457 = vadd.xlane.f32.xlu0 %v456_v19 }
 0x28e   : > { %v458_v23 = vpop.xlane.xlu0 %457 }
 0x28f   : > { %879 = vrcp.f32 %v458_v23 }
 0x299   : > { %v880_v24 = vpop.eup %879 }
 0x29a   : > { %v460_v25 = vmul.f32 %v880_v24, %v878_v18 }
 0x29c   : > { %v461_v26 = vpack.c.bf16 %v460_v25, %v460_v25  ;;  %510 = vst.msk [vmem:[%s384_s16] sm:$0xff] %vm449_vm2, %v460_v25 }
 0x29e   : > { %779 = vmatmul.mubr.msk.bf16.vlgmr.msra.gmra.mrb[0].mxu1 %vm449_vm2, %v461_v26 }
 0x29f   : > { %984 = shalt.err (!%p981_p12)
}
 0x2a0   : > { %s985_s27 = scalar_lea.hbm %s1392_s10, 128  ;;  %s989_s8 = scalar_lea.hbm %s1478_s5, 1024 }
 0x2a1   : > { %p986_p6 = scmp.ne.s32.totalorder %s1392_s10, %s985_s27  ;;  %p990_p3 = scmp.lt.u32.totalorder %s1392_s10, %s1478_s5 }
 0x2a2   : > { %p991_p0 = scmp.lt.u32.totalorder %s989_s8, %s985_s27  ;;  %p993_p10 = scmp.lt.u32.totalorder %s985_s27, %s1392_s10 }
 0x2a3   : > { %p987_p5 = pnand %p986_p6, %p1514_p1 }
 0x2a4   : > { %p992_p4 = por %p991_p0, %p990_p3 }
 0x2a5   : > { %p988_p7 = pneg %p987_p5 }
 0x2a6   : > { %p994_p2 = por %p993_p10, %p992_p4 }
 0x2a8   : > { %p995_p8 = pnand %p994_p2, %p988_p7 }
 0x2aa   : > { %998 = shalt.err (!%p995_p8)
}
 0x2ab   : > { %789 = dma.vmem_to_hbm [thread:$0]  (%p1514_p1), %s550_s11, 128, %s1392_s10, %s517_s25  }
 0x2ac   : > { %s377_s7 = scalar_lea.vmem [#allocation8], %s1355_s30  ;;  %s1418_s14 = scalar_lea.hbm %s1477_s4, %s761_s6 }
 0x2ad   : > { %s533_s17 = sshll.u32 %s377_s7, 4  ;;  %s512_s15 = scalar_lea.sflag [#allocation4], %s1352_s28  ;;  %s1420_s17 = int_to_ptr.vmem [resolvable:$true] %s533_s17 }
 0x2ae   : > { %s999_s10 = scalar_lea.vmem %s1420_s17, 128  ;;  %s1113_s30 = smov [#allocation8]  }
 0x2af   : > { %p1000_p9 = scmp.ne.s32.totalorder %s1420_s17, %s999_s10  ;;  %s1003_s1 = sshll.u32 %s1113_s30, 4  ;;  %s1004_s1 = int_to_ptr.vmem [resolvable:$false] %s1003_s1 }
 0x2b0   : > { %s1005_s6 = scalar_lea.vmem %s1004_s1, 256  ;;  %p1006_p12 = scmp.lt.s32.totalorder %s1420_s17, %s1004_s1 }
 0x2b1   : > { %p1001_p11 = pnand %p1000_p9, %p1514_p1  ;;  %p1007_p6 = scmp.lt.s32.totalorder %s1005_s6, %s999_s10 }
 0x2b3   : > { %p1002_p13 = pneg %p1001_p11  ;;  %p1008_p5 = por %p1007_p6, %p1006_p12 }
 0x2b5   : > { %p1009_p7 = pnand %p1008_p5, %p1002_p13 }
 0x371   : > { %v503_v27 = vpop.f32.mrb[0].mxu1 }
 0x372   : > { %509 = vst.msk [vmem:[%s377_s7] sm:$0xff] %vm402_vm1, %v503_v27  ;;  %v780_v28 = vpop.f32.mrb[1].mxu1 }
 0x373   : > { %v506_v29 = vpop.f32.mrb[2].mxu1 }
 0x374   : > { %1012 = shalt.err (!%p1009_p7)
}
 0x375   : > { %s1013_s28 = scalar_lea.hbm %s1418_s14, 128  ;;  %s1017_s18 = scalar_lea.hbm %s1477_s4, 1024 }
 0x376   : > { %p1014_p3 = scmp.ne.s32.totalorder %s1418_s14, %s1013_s28  ;;  %p1018_p10 = scmp.lt.u32.totalorder %s1418_s14, %s1477_s4 }
 0x377   : > { %p1019_p2 = scmp.lt.u32.totalorder %s1017_s18, %s1013_s28  ;;  %p1021_p9 = scmp.lt.u32.totalorder %s1013_s28, %s1418_s14 }
 0x378   : > { %p1015_p0 = pnand %p1014_p3, %p1514_p1 }
 0x379   : > { %p1020_p8 = por %p1019_p2, %p1018_p10 }
 0x37a   : > { %p1016_p4 = pneg %p1015_p0 }
 0x37b   : > { %p1022_p11 = por %p1021_p9, %p1020_p8 }
 0x37d   : > { %p1023_p13 = pnand %p1022_p11, %p1016_p4 }
 0x37f   : > { %1026 = shalt.err (!%p1023_p13)
}
 0x380   : > { %788 = dma.vmem_to_hbm [thread:$0]  (%p1514_p1), %s1420_s17, 128, %s1418_s14, %s512_s15   ;;  %v781_v30 = vpop.f32.mrb[3].mxu1 }
 0x381 PF: > { %s1515_s13 = sld [smem:[#allocation18_spill]]  ;;  %s1516_s27 = sld [smem:[#allocation15_spill]] }
 0x382   : > { %s1517_s24 = sld [smem:[#allocation21_spill]] }
 0x387   : > { %p810_p12 = scmp.ge.s32.totalorder %s1515_s13, 2  ;;  %s561_s26 = sand.u32 1, %s1516_s27  }
 0x388   : > { %p1518_p6 = scmp.ne.s32.totalorder %s1517_s24, 0  ;;  %s562_s8 = scalar_lea.sflag [#allocation4], %s561_s26 }
 0x38a   : > { %p803_p5 = pnand %p810_p12, %p1518_p6 }
 0x38c   : > { %1068 = dma.done.wait (!%p803_p5), %s562_s8, 128  }
 0x38d   : > { %1070 = vsyncadd (!%p803_p5), %s562_s8, 4294967168  ;;  %s571_s23 = scalar_lea.sflag [#allocation10], %s561_s26 }
 0x38e   : > { %1072 = dma.done.wait (!%p803_p5), %s571_s23, 128  }
 0x38f   : > { %1074 = vsyncadd (!%p803_p5), %s571_s23, 4294967168  ;;  %s28_s25 = sadd.s32 1, %s1515_s13   ;;  %s1519_s9 = sld [smem:[#allocation22_spill]] }
 0x390   : > { %p25_p7 = scmp.ge.s32.totalorder %s28_s25, 10   ;;  %s1520_s21 = sld [smem:[#allocation16_spill]] }
 0x391   : > { %s1521_s22 = sld [smem:[#allocation17_spill]]  ;;  %s1522_s23 = sld [smem:[#allocation19_spill]] }
 0x392   : > { %s1523_s24 = sld [smem:[#allocation20_spill]]  ;;  %s1524_s18 = smov %s1081_s19 }
 0x393   : > { %s1525_s19 = smov %s1085_s20  ;;  %27 = sbr.rel (!%p25_p7) target bundleno = 13 (0xd), region = 125 }
 0x395   : > { %s1526_s20 = smov %s1519_s9 }
 0x39a   :  { %576 = vsyncpa [#allocation3], 1 }
 0x39b   :  { %578 = vsyncpa [#allocation3 + $0x1], 1 }
 0x39c   :  { %579 = vsyncpa [#allocation6], 1 }
 0x39d   :  { %581 = vsyncpa [#allocation6 + $0x1], 1 }
 0x39e   :  { %582 = vsyncpa [#allocation4], 1 }
 0x39f   :  { %584 = vsyncpa [#allocation4 + $0x1], 1 }
 0x3a0   :  { %585 = vsyncpa [#allocation10], 1 }
 0x3a1   :  { %587 = vsyncpa [#allocation10 + $0x1], 1 }

</bundles_post_ra>
